<compile_context>
chip_gen: v7x
topology: tpu7x:2x2x1
jax: 0.10.0
libtpu: 0.0.40
codegen_flags: <defaults>
</compile_context>

<pallas_src>
import functools

import jax
import jax.numpy as jnp
from jax.experimental import pallas as pl
from jax.experimental.pallas import tpu as pltpu

_LANE = 128            # vreg lane width
_SUBLANE = 8           # f32 vreg sublane count
_MAX_TILE_ROWS = 512   # packed rows per tile (= 512*pack batch rows); ~1 MiB/buffer


def _round_up(x, m):
    return (x + m - 1) // m * m


def _linear_kernel(x_ref, w_ref, b_ref, o_ref):
    """One batch tile: [tr, K] @ [K, N] + [1, N] -> [tr, N] (all lane-dense)."""
    acc = jnp.dot(x_ref[...], w_ref[...], preferred_element_type=jnp.float32)
    o_ref[...] = (acc + b_ref[...]).astype(o_ref.dtype)


@functools.partial(jax.jit, static_argnames=("force_pallas", "max_tile_rows"))
def linear_q_network(obs, weight, bias, *, force_pallas=False,
                     max_tile_rows=_MAX_TILE_ROWS):
    """y = obs @ weight.T + bias  (nn.Linear / LinearQNetwork forward).

    obs:    [B, obs_dim]            float32
    weight: [action_dim, obs_dim]   float32 (PyTorch nn.Linear layout)
    bias:   [action_dim]            float32
    returns [B, action_dim]         float32
    """
    B, obs_dim = obs.shape
    action_dim, obs_dim_w = weight.shape
    assert obs_dim == obs_dim_w and bias.shape == (action_dim,)

    # Tiny batches: launch overhead dominates; plain XLA is strictly faster.
    if not force_pallas and B < 256:
        return obs @ weight.T + bias

    # ---- Lane-packing ------------------------------------------------------
    # Pack `pack` consecutive batch rows into one lane-dense row:
    #   obs  [B, obs_dim]   -> [R, pack*obs_dim]            (free reshape)
    #   W.T  [obs_dim, act] -> kron(I_pack, W.T)            [pack*obs_dim, pack*act]
    #   bias [act]          -> tile(bias, pack)[None, :]    [1, pack*act]
    # Row r, lane group p of the output holds the Q-values of batch row
    # r*pack + p, so the [R, pack*act] output reshapes back to [B, act] free.
    pack = max(1, _LANE // action_dim)          # 16 for action_dim=8
    k_packed = pack * obs_dim                   # 512 for obs_dim=32
    n_packed = pack * action_dim                # 128 for action_dim=8

    b_pad = _round_up(B, pack)
    if b_pad != B:                              # never taken when B % pack == 0
        obs = jnp.pad(obs, ((0, b_pad - B), (0, 0)))
    r_rows = b_pad // pack
    obs_packed = obs.reshape(r_rows, k_packed)

    w_bd = jnp.kron(jnp.eye(pack, dtype=weight.dtype), weight.T)   # block-diag [K, N]
    b_tiled = jnp.tile(bias, pack).reshape(1, n_packed)

    # ---- Tile the packed-row axis -------------------------------------------
    # Aim for >= 2 grid steps (one tile stream per v7x TensorCore) and only a
    # handful of steps so the ~0.35 us/step fixed overhead stays negligible.
    if r_rows <= _SUBLANE:
        tile_rows = r_rows                                       # block == full extent
    elif r_rows <= 2 * max_tile_rows:
        tile_rows = _round_up(pl.cdiv(r_rows, 2), _SUBLANE)      # exactly 2 steps
    else:
        tile_rows = max_tile_rows
    grid = (pl.cdiv(r_rows, tile_rows),)        # trailing block masked if ragged

    out = pl.pallas_call(
        _linear_kernel,
        out_shape=jax.ShapeDtypeStruct((r_rows, n_packed), obs.dtype),
        grid_spec=pltpu.PrefetchScalarGridSpec(
            num_scalar_prefetch=0,
            grid=grid,
            in_specs=[
                # obs: one lane-dense batch tile per grid step (double-buffered DMA).
                pl.BlockSpec((tile_rows, k_packed), lambda i: (i, 0)),
                # block-diagonal weight / tiled bias: constant index -> fetched
                # once, VMEM-resident across all batch tiles.
                pl.BlockSpec((k_packed, n_packed), lambda i: (0, 0)),
                pl.BlockSpec((1, n_packed), lambda i: (0, 0)),
            ],
            out_specs=pl.BlockSpec((tile_rows, n_packed), lambda i: (i, 0)),
        ),
        compiler_params=pltpu.CompilerParams(
            # Batch tiles are independent -> shard grid steps across v7x's 2 TCs.
            # No vmem_limit_bytes override: ~3 MiB footprint fits the default
            # scoped limit on v5e/v6e/v7x with large headroom.
            dimension_semantics=("parallel",),
        ),
    )(obs_packed, w_bd, b_tiled)

    # Free reshape back to [b_pad, action_dim]; slice only if we padded B.
    out = out.reshape(b_pad, action_dim)
    return out if b_pad == B else out[:B]


if __name__ == "__main__":
    # Small shapes consistent with the module: obs_dim=32, action_dim=8, batch=2.
    B, obs_dim, action_dim = 2, 32, 8

    key = jax.random.PRNGKey(0)
    k_obs, k_w, k_b = jax.random.split(key, 3)

    # Deterministic parameter init mimicking nn.Linear's default:
    # U(-1/sqrt(obs_dim), 1/sqrt(obs_dim)), weight in PyTorch [out, in] layout.
    bound = 1.0 / jnp.sqrt(jnp.float32(obs_dim))
    weight = jax.random.uniform(k_w, (action_dim, obs_dim), jnp.float32,
                                minval=-bound, maxval=bound)
    bias = jax.random.uniform(k_b, (action_dim,), jnp.float32,
                              minval=-bound, maxval=bound)
    obs = jax.random.normal(k_obs, (B, obs_dim), jnp.float32)

    # Force the Pallas path at the tiny shape so the kernel is exercised.
    out = jax.block_until_ready(linear_q_network(obs, weight, bias, force_pallas=True))
    ref = obs @ weight.T + bias
    assert out.shape == (B, action_dim)
    assert jnp.allclose(out, ref, atol=1e-5, rtol=1e-5)

    # Realistic replay-batch size: lane-packed, 2-step grid, no pad / no slice.
    B_big = 4096
    obs_big = jax.random.normal(jax.random.PRNGKey(1), (B_big, obs_dim), jnp.float32)
    out_big = jax.block_until_ready(linear_q_network(obs_big, weight, bias))
    ref_big = obs_big @ weight.T + bias
    assert out_big.shape == (B_big, action_dim)
    assert jnp.allclose(out_big, ref_big, atol=1e-4, rtol=1e-5)

    print("KERNEL_OK")
</pallas_src>

<mosaic_0001>
module attributes {stable_mosaic.version = 11 : i64} {
  func.func @_linear_kernel(%arg0: i32, %arg1: memref<1x512xf32, #tpu.memory_space<vmem>>, %arg2: memref<512x128xf32, #tpu.memory_space<vmem>>, %arg3: memref<1x128xf32, #tpu.memory_space<vmem>>, %arg4: memref<1x128xf32, #tpu.memory_space<vmem>>) attributes {dimension_semantics = [#tpu.dimension_semantics<parallel>], iteration_bounds = array<i64: 1>, scalar_prefetch = 0 : i64, scratch_operands = 0 : i64, tpu.core_type = #tpu.core_type<tc>, window_params = [{transform_indices = @transform_0, window_bounds = array<i64: 1, 512>}, {pipeline_mode = #tpu.pipeline_mode<synchronous>, transform_indices = @transform_1, window_bounds = array<i64: 512, 128>}, {pipeline_mode = #tpu.pipeline_mode<synchronous>, transform_indices = @transform_2, window_bounds = array<i64: 1, 128>}, {transform_indices = @transform_3, window_bounds = array<i64: 1, 128>}]} {
    %c0 = arith.constant 0 : index
    %c0_0 = arith.constant 0 : index
    %0 = vector.load %arg1[%c0, %c0_0] : memref<1x512xf32, #tpu.memory_space<vmem>>, vector<1x512xf32>
    %c0_1 = arith.constant 0 : index
    %c0_2 = arith.constant 0 : index
    %1 = vector.load %arg2[%c0_1, %c0_2] : memref<512x128xf32, #tpu.memory_space<vmem>>, vector<512x128xf32>
    %cst = arith.constant dense<0.000000e+00> : vector<1x128xf32>
    %2 = tpu.matmul %0, %1, %cst {dimension_numbers = #tpu.dot_dimension_numbers<[1], [0], [0], [1], [0, 0, 1, 1], [], []>} : vector<1x512xf32>, vector<512x128xf32>, vector<1x128xf32> -> vector<1x128xf32>
    %c0_3 = arith.constant 0 : index
    %c0_4 = arith.constant 0 : index
    %3 = vector.load %arg3[%c0_3, %c0_4] : memref<1x128xf32, #tpu.memory_space<vmem>>, vector<1x128xf32>
    %4 = arith.addf %2, %3 : vector<1x128xf32>
    %c0_5 = arith.constant 0 : index
    %c0_6 = arith.constant 0 : index
    %5 = vector.load %arg4[%c0_5, %c0_6] : memref<1x128xf32, #tpu.memory_space<vmem>>, vector<1x128xf32>
    tpu.vector_store %arg4[%c0_5, %c0_6], %4 {strides = array<i32>} : memref<1x128xf32, #tpu.memory_space<vmem>>, vector<1x128xf32>,
    return
  }
  func.func @transform_0(%arg0: i32) -> (i32, i32) {
    %c0_i32 = arith.constant 0 : i32
    %c0_i32_0 = arith.constant 0 : i32
    return %arg0, %c0_i32 : i32, i32
  }
  func.func @transform_1(%arg0: i32) -> (i32, i32) {
    %c0_i32 = arith.constant 0 : i32
    %c0_i32_0 = arith.constant 0 : i32
    %c0_i32_1 = arith.constant 0 : i32
    return %c0_i32, %c0_i32_0 : i32, i32
  }
  func.func @transform_2(%arg0: i32) -> (i32, i32) {
    %c0_i32 = arith.constant 0 : i32
    %c0_i32_0 = arith.constant 0 : i32
    %c0_i32_1 = arith.constant 0 : i32
    return %c0_i32, %c0_i32_0 : i32, i32
  }
  func.func @transform_3(%arg0: i32) -> (i32, i32) {
    %c0_i32 = arith.constant 0 : i32
    %c0_i32_0 = arith.constant 0 : i32
    return %arg0, %c0_i32 : i32, i32
  }
}

</mosaic_0001>

<bundles_post_ra>
// kernel: tile.8
= control target key start
LH: loop header
LB: loop body
LE: loop exit
PB: predicated region body
PF: predicated region fallthrough
CT: control target
= control target key end

     0   :  { %s28_s0 = inlined_call_operand.vmem [shape: f32[8], index: 0, kind: input, shape index: {}]   ;;  %s29_s1 = inlined_call_operand.vmem [shape: f32[16,8], index: 1, kind: output, shape index: {}]  }
   0x1   :  { %v4_v0 = vld [vmem:[%s28_s0] ss:$0 sm:$0xff] }
   0x2   :  { %5 = vst [vmem:[%s29_s1] sm:$0xff] %v4_v0  ;;  %8 = vst [vmem:[%s29_s1 + $0x8] sm:$0xff] %v4_v0 }

// kernel: tile.9
= control target key start
LH: loop header
LB: loop body
LE: loop exit
PB: predicated region body
PF: predicated region fallthrough
CT: control target
= control target key end

     0   :  { %s131_s10 = smov 120   ;;  %s132_s11 = smov 104   ;;  %vm3_vm0 = vcmask 64512   ;;  %vm9_vm1 = vcmask 1048512   ;;  %vm15_vm2 = vcmask 982912   ;;  %vm21_vm3 = vcmask 917312   ;;  %s207_s0 = inlined_call_operand.vmem [shape: f32[16,8], index: 0, kind: input, shape index: {}]   ;;  %s208_s1 = inlined_call_operand.vmem [shape: f32[1,128], index: 1, kind: output, shape index: {}]  }
   0x1   :  { %v101_v0 = vld [vmem:[%s207_s0 + $0xf] sm:$0x1]   ;;  %v103_v1 = vld [vmem:[%s207_s0 + $0xd] sm:$0x1]   ;;  %v102_v2 = vld [vmem:[%s207_s0 + $0xe] sm:$0x1]  }
   0x2   :  { %7 = vrot.lane.b32.xlu0 %v101_v0, %s131_s10  ;;  %19 = vrot.lane.b32.xlu1 %v103_v1, %s132_s11  ;;  %v104_v3 = vld [vmem:[%s207_s0 + $0xc] sm:$0x1]   ;;  %s133_s16 = smov 112   ;;  %s134_s17 = smov 96   ;;  %v105_v4 = vld [vmem:[%s207_s0 + $0xb] sm:$0x1]  }
   0x3   :  { %v106_v5 = vld [vmem:[%s207_s0 + $0xa] sm:$0x1]   ;;  %v2_v6 = vld [vmem:[%s207_s0] sm:$0x1]   ;;  %s135_s24 = smov 88   ;;  %s136_s25 = smov 80  }
   0x4   :  { %4 = vst.msk [vmem:[#allocation0] sm:$0x1] %vm3_vm0, %v2_v6   ;;  %v107_v7 = vld [vmem:[%s207_s0 + $0x9] sm:$0x1]   ;;  %v108_v8 = vld [vmem:[%s207_s0 + $0x8] sm:$0x1]  }
   0x5   :  { %s137_s30 = smov 72   ;;  %s138_s2 = smov 64   ;;  %v109_v9 = vld [vmem:[%s207_s0 + $0x7] sm:$0x1]   ;;  %v110_v10 = vld [vmem:[%s207_s0 + $0x6] sm:$0x1]  }
   0x6   :  { %13 = vrot.lane.b32.xlu0 %v102_v2, %s133_s16  ;;  %25 = vrot.lane.b32.xlu1 %v104_v3, %s134_s17  ;;  %s139_s7 = smov 56   ;;  %s140_s8 = smov 48   ;;  %v111_v11 = vld [vmem:[%s207_s0 + $0x5] sm:$0x1]   ;;  %v112_v12 = vld [vmem:[%s207_s0 + $0x4] sm:$0x1]  }
   0x7   :  { %s141_s13 = smov 40   ;;  %s142_s14 = smov 32   ;;  %v113_v13 = vld [vmem:[%s207_s0 + $0x3] sm:$0x1]   ;;  %v114_v14 = vld [vmem:[%s207_s0 + $0x2] sm:$0x1]  }
   0x8   :  { %s143_s19 = smov 24   ;;  %s144_s20 = smov 16   ;;  %v115_v15 = vld [vmem:[%s207_s0 + $0x1] sm:$0x1]   ;;  %vm27_vm4 = vcmask 851712   ;;  %vm33_vm5 = vcmask 786112  }
   0x9   :  { %s145_s0 = smov 8   ;;  %vm39_vm6 = vcmask 720512   ;;  %vm45_vm7 = vcmask 654912   ;;  %vm51_vm8 = vcmask 589312   ;;  %vm57_vm9 = vcmask 523712  }
   0xa   :  { %31 = vrot.lane.b32.xlu0 %v105_v4, %s135_s24  ;;  %37 = vrot.lane.b32.xlu1 %v106_v5, %s136_s25  ;;  %vm63_vm10 = vcmask 458112   ;;  %vm69_vm11 = vcmask 392512   ;;  %vm75_vm12 = vcmask 326912   ;;  %vm81_vm13 = vcmask 261312  }
   0xb   :  { %vm87_vm14 = vcmask 195712   ;;  %vm93_vm15 = vcmask 130112  }
   0xe   :  { %43 = vrot.lane.b32.xlu0 %v107_v7, %s137_s30  ;;  %49 = vrot.lane.b32.xlu1 %v108_v8, %s138_s2 }
  0x12   :  { %55 = vrot.lane.b32.xlu0 %v109_v9, %s139_s7  ;;  %61 = vrot.lane.b32.xlu1 %v110_v10, %s140_s8 }
  0x16   :  { %67 = vrot.lane.b32.xlu0 %v111_v11, %s141_s13  ;;  %73 = vrot.lane.b32.xlu1 %v112_v12, %s142_s14 }
  0x1a   :  { %79 = vrot.lane.b32.xlu0 %v113_v13, %s143_s19  ;;  %85 = vrot.lane.b32.xlu1 %v114_v14, %s144_s20 }
  0x1e   :  { %91 = vrot.lane.b32.xlu0 %v115_v15, %s145_s0 }
  0x74   :  { %v8_v16 = vpop.permute.xlu0 %7   ;;  %v20_v17 = vpop.permute.xlu1 %19  }
  0x75   :  { %10 = vst.msk [vmem:[#allocation0] sm:$0x1] %vm9_vm1, %v8_v16  }
  0x78   :  { %v14_v18 = vpop.permute.xlu0 %13   ;;  %v26_v19 = vpop.permute.xlu1 %25  }
  0x79   :  { %16 = vst.msk [vmem:[#allocation0] sm:$0x1] %vm15_vm2, %v14_v18  }
  0x7a   :  { %22 = vst.msk [vmem:[#allocation0] sm:$0x1] %vm21_vm3, %v20_v17  }
  0x7b   :  { %28 = vst.msk [vmem:[#allocation0] sm:$0x1] %vm27_vm4, %v26_v19  }
  0x7c   :  { %v32_v20 = vpop.permute.xlu0 %31   ;;  %v38_v21 = vpop.permute.xlu1 %37  }
  0x7d   :  { %34 = vst.msk [vmem:[#allocation0] sm:$0x1] %vm33_vm5, %v32_v20  }
  0x7e   :  { %40 = vst.msk [vmem:[#allocation0] sm:$0x1] %vm39_vm6, %v38_v21  }
  0x80   :  { %v44_v22 = vpop.permute.xlu0 %43   ;;  %v50_v23 = vpop.permute.xlu1 %49  }
  0x81   :  { %46 = vst.msk [vmem:[#allocation0] sm:$0x1] %vm45_vm7, %v44_v22  }
  0x82   :  { %52 = vst.msk [vmem:[#allocation0] sm:$0x1] %vm51_vm8, %v50_v23  }
  0x84   :  { %v56_v24 = vpop.permute.xlu0 %55   ;;  %v62_v25 = vpop.permute.xlu1 %61  }
  0x85   :  { %58 = vst.msk [vmem:[#allocation0] sm:$0x1] %vm57_vm9, %v56_v24  }
  0x86   :  { %64 = vst.msk [vmem:[#allocation0] sm:$0x1] %vm63_vm10, %v62_v25  }
  0x88   :  { %v68_v26 = vpop.permute.xlu0 %67   ;;  %v74_v27 = vpop.permute.xlu1 %73  }
  0x89   :  { %70 = vst.msk [vmem:[#allocation0] sm:$0x1] %vm69_vm11, %v68_v26  }
  0x8a   :  { %76 = vst.msk [vmem:[#allocation0] sm:$0x1] %vm75_vm12, %v74_v27  }
  0x8c   :  { %v80_v28 = vpop.permute.xlu0 %79   ;;  %v86_v29 = vpop.permute.xlu1 %85  }
  0x8d   :  { %82 = vst.msk [vmem:[#allocation0] sm:$0x1] %vm81_vm13, %v80_v28  }
  0x8e   :  { %88 = vst.msk [vmem:[#allocation0] sm:$0x1] %vm87_vm14, %v86_v29  }
  0x90   :  { %v92_v30 = vpop.permute.xlu0 %91  }
  0x91   :  { %94 = vst.msk [vmem:[#allocation0] sm:$0x1] %vm93_vm15, %v92_v30  }
  0x98   :  { %v98_v31 = vld [vmem:[#allocation0] sm:$0x1] }
  0x99   :  { %100 = vst [vmem:[%s208_s1] sm:$0x1] %v98_v31 }

// kernel: linear_q_network.1
= control target key start
LH: loop header
LB: loop body
LE: loop exit
PB: predicated region body
PF: predicated region fallthrough
CT: control target
= control target key end

     0   :  { %v81_v47 = vlaneseq  ;;  %s607_s1 = inlined_call_operand.vmem [shape: f32[512,128], index: 1, kind: input, shape index: {}]   ;;  %s608_s0 = inlined_call_operand.vmem [shape: f32[1,512], index: 0, kind: input, shape index: {}]   ;;  %s609_s2 = inlined_call_operand.vmem [shape: f32[1,128], index: 2, kind: input, shape index: {}]   ;;  %s610_s3 = inlined_call_operand.vmem [shape: f32[1,128], index: 3, kind: output, shape index: {}]  }
   0x1   :  { %v31_v0 = vld [vmem:[%s607_s1 + $0x80] sm:$0xff]  ;;  %v32_v1 = vld [vmem:[%s607_s1 + $0x88] sm:$0xff]  ;;  %v33_v11 = vld [vmem:[%s607_s1 + $0x90] sm:$0xff] }
   0x2   :  { %v15_v2 = vld [vmem:[%s607_s1] sm:$0xff]  ;;  %v316_v3 = vpack.c.bf16 %v32_v1, %v31_v0  ;;  %v16_v4 = vld [vmem:[%s607_s1 + $0x8] sm:$0xff]  ;;  %v34_v13 = vld [vmem:[%s607_s1 + $0x98] sm:$0xff]  ;;  %v526_v61 = vshrl.u32 %v81_v47, 7 }
   0x3   :  { %v63_v5 = vld [vmem:[%s607_s1 + $0x180] sm:$0xff]  ;;  %v64_v6 = vld [vmem:[%s607_s1 + $0x188] sm:$0xff]  ;;  %v318_v7 = vpack.c.bf16 %v16_v4, %v15_v2  ;;  %v17_v14 = vld [vmem:[%s607_s1 + $0x10] sm:$0xff]  ;;  %v320_v16 = vpack.c.bf16 %v34_v13, %v33_v11 }
   0x4   :  { %v348_v8 = vpack.c.bf16 %v64_v6, %v63_v5  ;;  %v47_v9 = vld [vmem:[%s607_s1 + $0x100] sm:$0xff]  ;;  %v48_v10 = vld [vmem:[%s607_s1 + $0x108] sm:$0xff]  ;;  %317 = vmatprep.subr.bf16.mxu0 %v316_v3  ;;  %v18_v15 = vld [vmem:[%s607_s1 + $0x18] sm:$0xff]  ;;  %v95_v11 = vsub.s32 3, %v526_v61 }
   0x5   :  { %v350_v12 = vpack.c.bf16 %v48_v10, %v47_v9  ;;  %319 = vmatpush3.bf16.msra.mxu0 %v318_v7  ;;  %v322_v17 = vpack.c.bf16 %v18_v15, %v17_v14  ;;  %v65_v18 = vld [vmem:[%s607_s1 + $0x190] sm:$0xff]  ;;  %v66_v19 = vld [vmem:[%s607_s1 + $0x198] sm:$0xff]  ;;  %v35_v23 = vld [vmem:[%s607_s1 + $0xa0] sm:$0xff]  ;;  %v87_v10 = vsub.s32 1, %v526_v61 }
   0x6   :  { %349 = vmatprep.subr.bf16.mxu1 %v348_v8  ;;  %v49_v20 = vld [vmem:[%s607_s1 + $0x110] sm:$0xff]  ;;  %v352_v21 = vpack.c.bf16 %v66_v19, %v65_v18  ;;  %v50_v22 = vld [vmem:[%s607_s1 + $0x118] sm:$0xff]  ;;  %v36_v24 = vld [vmem:[%s607_s1 + $0xa8] sm:$0xff]  ;;  %321 = vmatprep.subr.bf16.mxu0 %v320_v16 }
   0x7   :  { %351 = vmatpush3.bf16.msra.mxu1 %v350_v12  ;;  %v354_v25 = vpack.c.bf16 %v50_v22, %v49_v20  ;;  %v324_v26 = vpack.c.bf16 %v36_v24, %v35_v23  ;;  %v19_v27 = vld [vmem:[%s607_s1 + $0x20] sm:$0xff]  ;;  %v20_v28 = vld [vmem:[%s607_s1 + $0x28] sm:$0xff]  ;;  %v37_v35 = vld [vmem:[%s607_s1 + $0xb0] sm:$0xff] }
   0x8   :  { %v67_v29 = vld [vmem:[%s607_s1 + $0x1a0] sm:$0xff]  ;;  %353 = vmatprep.subr.bf16.mxu1 %v352_v21  ;;  %v68_v30 = vld [vmem:[%s607_s1 + $0x1a8] sm:$0xff]  ;;  %v326_v33 = vpack.c.bf16 %v20_v28, %v19_v27  ;;  %v38_v36 = vld [vmem:[%s607_s1 + $0xb8] sm:$0xff] }
   0x9   :  { %v51_v31 = vld [vmem:[%s607_s1 + $0x120] sm:$0xff]  ;;  %v52_v32 = vld [vmem:[%s607_s1 + $0x128] sm:$0xff]  ;;  %323 = vmatpush3.bf16.msra.mxu0 %v322_v17  ;;  %v356_v34 = vpack.c.bf16 %v68_v30, %v67_v29  ;;  %v21_v37 = vld [vmem:[%s607_s1 + $0x30] sm:$0xff]  ;;  %v328_v39 = vpack.c.bf16 %v38_v36, %v37_v35 }
   0xa   :  { %325 = vmatprep.subr.bf16.mxu0 %v324_v26  ;;  %v358_v38 = vpack.c.bf16 %v52_v32, %v51_v31  ;;  %v22_v40 = vld [vmem:[%s607_s1 + $0x38] sm:$0xff]  ;;  %v69_v41 = vld [vmem:[%s607_s1 + $0x1b0] sm:$0xff]  ;;  %v39_v46 = vld [vmem:[%s607_s1 + $0xc0] sm:$0xff] }
   0xb   :  { %355 = vmatpush3.bf16.msra.mxu1 %v354_v25  ;;  %v70_v42 = vld [vmem:[%s607_s1 + $0x1b8] sm:$0xff]  ;;  %v53_v44 = vld [vmem:[%s607_s1 + $0x130] sm:$0xff]  ;;  %v40_v48 = vld [vmem:[%s607_s1 + $0xc8] sm:$0xff]  ;;  %v330_v49 = vpack.c.bf16 %v22_v40, %v21_v37  ;;  %v83_v37 = vsub.s32 0, %v526_v61 }
   0xc   :  { %357 = vmatprep.subr.bf16.mxu1 %v356_v34  ;;  %v360_v43 = vpack.c.bf16 %v70_v42, %v69_v41  ;;  %v54_v45 = vld [vmem:[%s607_s1 + $0x138] sm:$0xff]  ;;  %v71_v50 = vld [vmem:[%s607_s1 + $0x1c0] sm:$0xff]  ;;  %v72_v51 = vld [vmem:[%s607_s1 + $0x1c8] sm:$0xff]  ;;  %v332_v53 = vpack.c.bf16 %v40_v48, %v39_v46 }
   0xd   :  { %327 = vmatpush3.bf16.msra.mxu0 %v326_v33  ;;  %v362_v52 = vpack.c.bf16 %v54_v45, %v53_v44  ;;  %v23_v54 = vld [vmem:[%s607_s1 + $0x40] sm:$0xff]  ;;  %v24_v55 = vld [vmem:[%s607_s1 + $0x48] sm:$0xff]  ;;  %v364_v57 = vpack.c.bf16 %v72_v51, %v71_v50  ;;  %v41_v59 = vld [vmem:[%s607_s1 + $0xd0] sm:$0xff] }
   0xe   :  { %329 = vmatprep.subr.bf16.mxu0 %v328_v39  ;;  %v55_v56 = vld [vmem:[%s607_s1 + $0x140] sm:$0xff]  ;;  %v56_v58 = vld [vmem:[%s607_s1 + $0x148] sm:$0xff]  ;;  %v42_v60 = vld [vmem:[%s607_s1 + $0xd8] sm:$0xff]  ;;  %v334_v0 = vpack.c.bf16 %v24_v55, %v23_v54  ;;  %v91_v39 = vsub.s32 2, %v526_v61 }
   0xf   :  { %359 = vmatpush3.bf16.msra.mxu1 %v358_v38  ;;  %v73_v62 = vld [vmem:[%s607_s1 + $0x1d0] sm:$0xff]  ;;  %v74_v63 = vld [vmem:[%s607_s1 + $0x1d8] sm:$0xff]  ;;  %v366_v1 = vpack.c.bf16 %v56_v58, %v55_v56  ;;  %v336_v2 = vpack.c.bf16 %v42_v60, %v41_v59  ;;  %v43_v8 = vld [vmem:[%s607_s1 + $0xe0] sm:$0xff] }
  0x10   :  { %361 = vmatprep.subr.bf16.mxu1 %v360_v43  ;;  %v25_v3 = vld [vmem:[%s607_s1 + $0x50] sm:$0xff]  ;;  %v26_v4 = vld [vmem:[%s607_s1 + $0x58] sm:$0xff]  ;;  %v368_v6 = vpack.c.bf16 %v74_v63, %v73_v62  ;;  %v44_v9 = vld [vmem:[%s607_s1 + $0xe8] sm:$0xff] }
  0x11   :  { %331 = vmatpush3.bf16.msra.mxu0 %v330_v49  ;;  %v57_v5 = vld [vmem:[%s607_s1 + $0x150] sm:$0xff]  ;;  %v58_v7 = vld [vmem:[%s607_s1 + $0x158] sm:$0xff]  ;;  %v75_v12 = vld [vmem:[%s607_s1 + $0x1e0] sm:$0xff]  ;;  %v338_v14 = vpack.c.bf16 %v26_v4, %v25_v3  ;;  %v340_v17 = vpack.c.bf16 %v44_v9, %v43_v8 }
  0x12   :  { %333 = vmatprep.subr.bf16.mxu0 %v332_v53  ;;  %v76_v13 = vld [vmem:[%s607_s1 + $0x1e8] sm:$0xff]  ;;  %v27_v15 = vld [vmem:[%s607_s1 + $0x60] sm:$0xff]  ;;  %v370_v16 = vpack.c.bf16 %v58_v7, %v57_v5  ;;  %v45_v23 = vld [vmem:[%s607_s1 + $0xf0] sm:$0xff] }
  0x13   :  { %363 = vmatpush3.bf16.msra.mxu1 %v362_v52  ;;  %v28_v18 = vld [vmem:[%s607_s1 + $0x68] sm:$0xff]  ;;  %v59_v19 = vld [vmem:[%s607_s1 + $0x160] sm:$0xff]  ;;  %v372_v21 = vpack.c.bf16 %v76_v13, %v75_v12  ;;  %v46_v24 = vld [vmem:[%s607_s1 + $0xf8] sm:$0xff] }
  0x14   :  { %365 = vmatprep.subr.bf16.mxu1 %v364_v57  ;;  %v14_v20 = vld [vmem:[%s608_s0] sm:$0xf]  ;;  %v60_v22 = vld [vmem:[%s607_s1 + $0x168] sm:$0xff]  ;;  %v77_v27 = vld [vmem:[%s607_s1 + $0x1f0] sm:$0xff]  ;;  %v342_v29 = vpack.c.bf16 %v28_v18, %v27_v15  ;;  %v344_v31 = vpack.c.bf16 %v46_v24, %v45_v23 }
  0x15   :  { %335 = vmatpush3.bf16.msra.mxu0 %v334_v0  ;;  %v88_v25 = vrot.slane %v14_v20, %v87_v10  ;;  %v96_v26 = vrot.slane %v14_v20, %v95_v11  ;;  %v78_v28 = vld [vmem:[%s607_s1 + $0x1f8] sm:$0xff]  ;;  %v374_v30 = vpack.c.bf16 %v60_v22, %v59_v19  ;;  %v29_v32 = vld [vmem:[%s607_s1 + $0x70] sm:$0xff]  ;;  %v84_v41 = vrot.slane %v14_v20, %v83_v37  ;;  %v79_v44 = vld [vmem:[%s609_s2] sm:$0x1] }
  0x16   :  { %337 = vmatprep.subr.bf16.mxu0 %v336_v2  ;;  %v30_v33 = vld [vmem:[%s607_s1 + $0x78] sm:$0xff]  ;;  %v376_v34 = vpack.c.bf16 %v78_v28, %v77_v27  ;;  %v61_v35 = vld [vmem:[%s607_s1 + $0x170] sm:$0xff]  ;;  %v92_v42 = vrot.slane %v14_v20, %v91_v39 }
  0x17   :  { %367 = vmatpush3.bf16.msra.mxu1 %v366_v1  ;;  %165 = vmatprep.mubr.f32.mxu0 %v88_v25  ;;  %v62_v36 = vld [vmem:[%s607_s1 + $0x178] sm:$0xff]  ;;  %v346_v38 = vpack.c.bf16 %v30_v33, %v29_v32 }
  0x18   :  { %369 = vmatprep.subr.bf16.mxu1 %v368_v6  ;;  %235 = vmatprep.mubr.f32.mxu1 %v96_v26  ;;  %v378_v40 = vpack.c.bf16 %v62_v36, %v61_v35 }
  0x19   :  { %339 = vmatpush3.bf16.msra.mxu0 %v338_v14 }
  0x1a   :  { %341 = vmatprep.subr.bf16.mxu0 %v340_v17 }
  0x1b   :  { %371 = vmatpush3.bf16.msra.mxu1 %v370_v16 }
  0x1c   :  { %373 = vmatprep.subr.bf16.mxu1 %v372_v21 }
  0x1d   :  { %343 = vmatpush3.bf16.msra.mxu0 %v342_v29 }
  0x1e   :  { %345 = vmatprep.subr.bf16.mxu0 %v344_v31 }
  0x1f   :  { %375 = vmatpush3.bf16.msra.mxu1 %v374_v30 }
  0x20   :  { %377 = vmatprep.subr.bf16.mxu1 %v376_v34 }
  0x21   :  { %347 = vmatpush3.bf16.msra.mxu0 %v346_v38 }
  0x23   :  { %379 = vmatpush3.bf16.msra.mxu1 %v378_v40 }
  0x24   :  { %166 = vmatmul.mubr.f32.vlgmr.msra.gmra.mrb[0].mxu0 %v84_v41 }
  0x26   :  { %236 = vmatmul.mubr.f32.vlgmr.msra.gmra.mrb[0].mxu1 %v92_v42 }
  0xf7   :  { %v278_v43 = vpop.f32.mrb[0].mxu0 }
  0xf8   :  { %v279_v45 = vpop.f32.mrb[1].mxu0 }
  0xf9   :  { %v313_v46 = vpop.f32.mrb[0].mxu1  ;;  %v280_v47 = vadd.f32 %v279_v45, %v278_v43 }
  0xfa   :  { %v314_v48 = vpop.f32.mrb[1].mxu1 }
  0xfb   :  { %v315_v49 = vadd.f32 %v314_v48, %v313_v46  ;;  %v168_v50 = vadd.f32 %v280_v47, %v79_v44 }
  0xfd   :  { %v238_v51 = vadd.f32 %v315_v49, %v168_v50 }
  0xff   :  { %241 = vst [vmem:[%s610_s3] sm:$0x1] %v238_v51 }

</bundles_post_ra>
